<compile_context>
chip_gen: v7x
topology: tpu7x:2x2x1
jax: 0.10.0
libtpu: 0.0.40
codegen_flags: <defaults>
</compile_context>

<pallas_src>
import jax
import jax.numpy as jnp
from jax.experimental import pallas as pl
from jax.experimental.pallas import tpu as pltpu
from typing import NamedTuple

EPS = 1e-5
LANE = 128                  # per-example time axis padded to this many lanes
K_PRO, STRIDE_PRO = 11, 2   # prologue conv
K_EPI, DIL_EPI = 29, 2      # epilogue conv1


class MBConfig(NamedTuple):
    Cin0: int               # input feature dim
    C: int                  # block width
    R: int                  # sub-blocks per block
    OUT: int                # number of classes
    ks: tuple               # depthwise kernel size per block
    roll_fwd: bool          # pltpu.roll direction (probed once at prep time)


# ---------------------------------------------------------------------------
# One-time parameter preparation (hoisted out of the forward pass)
# ---------------------------------------------------------------------------
def _w2d(w):
    """PyTorch conv weight (Cout, Cin, K) -> (Cout, K*Cin), tap-major rows."""
    cout, cin, k = w.shape
    return jnp.transpose(w, (0, 2, 1)).reshape(cout, k * cin)


def _fold_bn(w, b, bn):
    """Fold eval-mode BatchNorm (running stats) into conv weight + bias."""
    scale = bn['gamma'] / jnp.sqrt(bn['var'] + EPS)
    return _w2d(w) * scale[:, None], (scale * (b - bn['mean']) + bn['beta'])[:, None]


def _probe_roll_direction():
    """Empirically determine pltpu.roll's rotation direction (once)."""
    def k(x_ref, o_ref):
        o_ref[...] = pltpu.roll(x_ref[...], shift=1, axis=1)
    x = jax.lax.broadcasted_iota(jnp.float32, (8, LANE), 1)
    y = pl.pallas_call(
        k,
        out_shape=jax.ShapeDtypeStruct((8, LANE), jnp.float32),
        in_specs=[pl.BlockSpec(memory_space=pltpu.MemorySpace.VMEM)],
        out_specs=pl.BlockSpec(memory_space=pltpu.MemorySpace.VMEM),
    )(x)
    # np.roll-style (elements move toward higher lane index) -> out[0,1] == 0
    return bool(y[0, 1] == 0.0)


def prepare_params(p, R):
    """Flatten + BN-fold all weights into the order the fused kernel expects."""
    ws = []
    w, b = _fold_bn(p['pro_w'], p['pro_b'], p['pro_bn'])
    ws += [w, b]
    ks = []
    for blk in p['blocks']:
        ks.append(int(blk['k']))
        rw, rb = _fold_bn(blk['res_w'], blk['res_b'], blk['res_bn'])
        ws += [rw, rb]
        for sub in blk['subs']:
            pw, pb = _fold_bn(sub['pw_w'], sub['pw_b'], sub['bn'])
            ws += [sub['dw_w'], sub['dw_b'].reshape(-1, 1), pw, pb]
    # epilogue conv1 + BN1 (folded)
    e1w, e1b = _fold_bn(p['epi1_w'], p['epi1_b'], p['epi1_bn'])
    ws += [e1w, e1b]
    # epilogue conv2+BN2 and conv3 are adjacent affine 1x1 ops (no activation
    # in between in the reference forward) -> fold into one (OUT,128) matvec.
    e2w, e2b = _fold_bn(p['epi2_w'], p['epi2_b'], p['epi2_bn'])
    e3w = p['epi3_w'][:, :, 0]
    e3b = p['epi3_b'].reshape(-1, 1)
    e23w = e3w @ e2w
    e23b = e3w @ e2b + e3b
    ws += [e23w, e23b]
    cfg = MBConfig(Cin0=int(p['pro_w'].shape[1]),
                   C=int(p['blocks'][0]['res_w'].shape[0]),
                   R=R, OUT=int(p['epi3_w'].shape[0]), ks=tuple(ks),
                   roll_fwd=_probe_roll_direction())
    return ws, cfg


# ---------------------------------------------------------------------------
# Fused kernel
# ---------------------------------------------------------------------------
def _make_fused_kernel(cfg: MBConfig, n_in, L1, Lf):
    Cin0, C, R, ks = cfg.Cin0, cfg.C, cfg.R, cfg.ks
    roll_fwd = cfg.roll_fwd

    def shl(v, m):   # y[..., p] = v[..., (p + m) % LANE]
        if m == 0:
            return v
        return pltpu.roll(v, shift=(LANE - m) if roll_fwd else m, axis=1)

    def shr(v, m):   # y[..., p] = v[..., (p - m) % LANE]
        if m == 0:
            return v
        return pltpu.roll(v, shift=m if roll_fwd else (LANE - m), axis=1)

    def kernel(*refs):
        in_refs = refs[:n_in]
        o_ref = refs[n_in]
        act_a, act_b, res_s, col = refs[n_in + 1:]

        it = iter(in_refs)
        xph_ref = next(it)
        pro_w, pro_b = next(it), next(it)
        blocks = []
        for _ in range(len(ks)):
            rw, rb = next(it), next(it)
            subs = [(next(it), next(it), next(it), next(it)) for _ in range(R)]
            blocks.append((rw, rb, subs))
        e1w, e1b, e23w, e23b = (next(it) for _ in range(4))

        lane_id = jax.lax.broadcasted_iota(jnp.int32, (1, LANE), 1)
        mask = (lane_id < L1).astype(jnp.float32)     # valid-time mask (1,128)

        def conv_im2col(get_tap, w_ref, b_ref, K, Cin, Cout):
            # stage the K shifted copies in VMEM, then contract in >=512-deep
            # MXU chunks (128-aligned contraction, one big dot instead of K).
            for j in range(K):
                col[j * Cin:(j + 1) * Cin, :] = get_tap(j)
            kc = K * Cin
            chunk = max(Cin, (512 // Cin) * Cin)
            acc = jnp.zeros((Cout, LANE), jnp.float32)
            s = 0
            while s < kc:
                e = min(s + chunk, kc)
                acc = acc + jnp.dot(w_ref[:, s:e], col[s:e, :],
                                    preferred_element_type=jnp.float32)
                s = e
            return acc + b_ref[...]

        # ---------------- prologue: conv(k=11, s=2) + BN + ReLU --------------
        phases = (xph_ref[0, 0], xph_ref[0, 1])       # load each phase ONCE
        y = conv_im2col(
            lambda j: shl(phases[j % STRIDE_PRO], j // STRIDE_PRO),
            pro_w, pro_b, K_PRO, Cin0, 128)
        act_a[0:128, :] = jnp.maximum(y, 0.0) * mask

        # ---------------- blocks --------------------------------------------
        cur, nxt = act_a, act_b
        cin = 128
        for bi, (rw, rb, subs) in enumerate(blocks):
            K = ks[bi]
            pad = K // 2
            # residual branch: pointwise conv + BN (folded)
            res_s[0:C, :] = (jnp.dot(rw[...], cur[0:cin, :],
                                     preferred_element_type=jnp.float32)
                             + rb[...])
            for r in range(R):
                dw_w, dw_b, pw_w, pw_b = subs[r]
                xv = cur[0:cin, :]
                acc = jnp.zeros((cin, LANE), jnp.float32)
                for j in range(K):        # depthwise: XLU rolls + VPU MAC
                    s = j - pad
                    xs = shl(xv, s) if s >= 0 else shr(xv, -s)
                    acc = acc + dw_w[:, j:j + 1] * xs
                d = acc + dw_b[...]
                # pointwise conv + BN (folded)
                y = (jnp.dot(pw_w[...], d, preferred_element_type=jnp.float32)
                     + pw_b[...])
                if r == R - 1:
                    y = y + res_s[0:C, :]
                nxt[0:C, :] = jnp.maximum(y, 0.0) * mask
                cur, nxt = nxt, cur
                cin = C

        # ---------------- epilogue + head ------------------------------------
        xe = cur[0:C, :]
        y1 = conv_im2col(lambda j: shl(xe, DIL_EPI * j), e1w, e1b, K_EPI, C, 128)
        # conv2+BN2 / conv3 / avg-pool are all affine -> pool FIRST, then one
        # (OUT,128)x(128,1) matvec with the pre-folded weights.
        lane_f = (lane_id < Lf).astype(jnp.float32)
        y1p = jnp.sum(y1 * lane_f, axis=1, keepdims=True) * (1.0 / Lf)  # (128,1)
        logits = (jnp.dot(e23w[...], y1p, preferred_element_type=jnp.float32)
                  + e23b[...])                                          # (OUT,1)
        m = jnp.max(logits, axis=0, keepdims=True)
        ez = jnp.exp(logits - m)
        o_ref[0] = ez / jnp.sum(ez, axis=0, keepdims=True)

    return kernel


def _const_index_map(ndim):
    return lambda n: (0,) * ndim


# ---------------------------------------------------------------------------
# Forward pass (one pallas_call, grid over batch)
# ---------------------------------------------------------------------------
def matchboxnet_pallas(x, weights, cfg: MBConfig):
    N, Cin0, L = x.shape
    assert Cin0 == cfg.Cin0
    C, OUT = cfg.C, cfg.OUT
    L1 = (L - K_PRO) // STRIDE_PRO + 1        # length after strided prologue
    Lf = L1 - DIL_EPI * (K_EPI - 1)           # length after dilated epilogue
    Lh = (L + 1) // 2
    assert 0 < Lf and L1 <= LANE and Lh <= LANE
    assert all(k % 2 == 1 for k in cfg.ks)    # 'same' padding assumes odd k
    assert L1 + max(cfg.ks) // 2 <= LANE      # roll wrap lands in zero padding

    # input glue: stride-phase split + per-example lane padding (zero fill)
    xe = jnp.pad(x, ((0, 0), (0, 0), (0, 2 * Lh - L)))
    xph = xe.reshape(N, Cin0, Lh, STRIDE_PRO).transpose(0, 3, 1, 2)
    xph = jnp.pad(xph, ((0, 0), (0, 0), (0, 0), (0, LANE - Lh)))  # (N,2,Cin0,128)

    args = [xph] + list(weights)
    in_specs = [pl.BlockSpec((1, STRIDE_PRO, Cin0, LANE),
                             lambda n: (n, 0, 0, 0))]
    for w in weights:
        in_specs.append(pl.BlockSpec(w.shape, _const_index_map(w.ndim)))
    n_in = len(args)

    col_rows = ((max(K_PRO * Cin0, K_EPI * C) + 7) // 8) * 8
    ch = max(128, ((C + 7) // 8) * 8)
    res_rows = ((C + 7) // 8) * 8

    kernel = _make_fused_kernel(cfg, n_in, L1, Lf)

    out = pl.pallas_call(
        kernel,
        out_shape=jax.ShapeDtypeStruct((N, OUT, 1), jnp.float32),
        grid=(N,),
        in_specs=in_specs,
        out_specs=pl.BlockSpec((1, OUT, 1), lambda n: (n, 0, 0)),
        scratch_shapes=[
            pltpu.VMEM((ch, LANE), jnp.float32),        # activation ping
            pltpu.VMEM((ch, LANE), jnp.float32),        # activation pong
            pltpu.VMEM((res_rows, LANE), jnp.float32),  # block residual
            pltpu.VMEM((col_rows, LANE), jnp.float32),  # im2col staging
        ],
        compiler_params=pltpu.CompilerParams(
            dimension_semantics=("parallel",)),
    )(*args)
    return out[:, :, 0]


# ---------------------------------------------------------------------------
# Pure-JAX reference (lax conv) for correctness check
# ---------------------------------------------------------------------------
def _ref_conv1d(x, w, b, stride=1, dilation=1, padding=0, groups=1):
    out = jax.lax.conv_general_dilated(
        x, w, window_strides=(stride,), padding=[(padding, padding)],
        rhs_dilation=(dilation,), dimension_numbers=('NCH', 'OIH', 'NCH'),
        feature_group_count=groups)
    return out + b[None, :, None]


def _ref_bn(x, gamma, beta, mean, var):
    return ((x - mean[None, :, None]) / jnp.sqrt(var[None, :, None] + EPS)
            * gamma[None, :, None] + beta[None, :, None])


def matchboxnet_ref(x, p, R):
    def cbn(x, w, b, bnp, stride=1, dilation=1):
        return _ref_bn(_ref_conv1d(x, w, b, stride=stride, dilation=dilation), **bnp)

    y = jax.nn.relu(cbn(x, p['pro_w'], p['pro_b'], p['pro_bn'], stride=2))
    for blk in p['blocks']:
        k = blk['k']
        res = cbn(y, blk['res_w'], blk['res_b'], blk['res_bn'])
        h = y
        for r, sub in enumerate(blk['subs']):
            cin = sub['dw_w'].shape[0]
            h = _ref_conv1d(h, sub['dw_w'].reshape(cin, 1, k), sub['dw_b'],
                            padding=k // 2, groups=cin)
            h = cbn(h, sub['pw_w'], sub['pw_b'], sub['bn'])
            if r == R - 1:
                h = h + res
            h = jax.nn.relu(h)
        y = h
    y = cbn(y, p['epi1_w'], p['epi1_b'], p['epi1_bn'], dilation=2)
    y = cbn(y, p['epi2_w'], p['epi2_b'], p['epi2_bn'])
    y = _ref_conv1d(y, p['epi3_w'], p['epi3_b'])
    y = jnp.mean(y, axis=2)                   # AdaptiveAvgPool1d(1) + squeeze
    return jax.nn.softmax(y, axis=1)


# ---------------------------------------------------------------------------
# Deterministic parameter construction
# ---------------------------------------------------------------------------
def make_params(key, input_dim, output_dim, B, R, C, kernel_sizes):
    cnt = [0]

    def norm(shape, scale=0.1):
        cnt[0] += 1
        return scale * jax.random.normal(jax.random.fold_in(key, cnt[0]),
                                         shape, jnp.float32)

    def bn(c):
        return dict(gamma=1.0 + norm((c,)), beta=norm((c,)),
                    mean=norm((c,)), var=1.0 + jnp.abs(norm((c,))))

    p = {}
    p['pro_w'] = norm((128, input_dim, 11)); p['pro_b'] = norm((128,))
    p['pro_bn'] = bn(128)

    blocks = []
    in_c = 128
    for i in range(B):
        k = kernel_sizes[i]
        blk = {'k': k,
               'res_w': norm((C, in_c, 1)), 'res_b': norm((C,)), 'res_bn': bn(C),
               'subs': []}
        cin = in_c
        for _ in range(R):
            blk['subs'].append({'dw_w': norm((cin, k)), 'dw_b': norm((cin,)),
                                'pw_w': norm((C, cin, 1)), 'pw_b': norm((C,)),
                                'bn': bn(C)})
            cin = C
        blocks.append(blk)
        in_c = C
    p['blocks'] = blocks

    p['epi1_w'] = norm((128, C, 29)); p['epi1_b'] = norm((128,)); p['epi1_bn'] = bn(128)
    p['epi2_w'] = norm((128, 128, 1)); p['epi2_b'] = norm((128,)); p['epi2_bn'] = bn(128)
    p['epi3_w'] = norm((output_dim, 128, 1)); p['epi3_b'] = norm((output_dim,))
    return p


# ---------------------------------------------------------------------------
if __name__ == "__main__":
    INPUT_DIM, OUTPUT_DIM, B, R, C = 32, 10, 2, 2, 64
    N, L = 2, 128
    kernel_sizes = [k * 2 + 11 for k in range(1, 6)]   # [13, 15, 17, 19, 21]

    key = jax.random.PRNGKey(0)
    params = make_params(key, INPUT_DIM, OUTPUT_DIM, B, R, C, kernel_sizes)
    x = jax.random.normal(jax.random.fold_in(key, 999),
                          (N, INPUT_DIM, L), jnp.float32)

    weights, cfg = prepare_params(params, R)
    fwd = jax.jit(lambda xx, ws: matchboxnet_pallas(xx, ws, cfg))
    out = jax.block_until_ready(fwd(x, weights))

    ref = matchboxnet_ref(x, params, R)
    assert out.shape == (N, OUTPUT_DIM), out.shape
    assert bool(jnp.allclose(jnp.sum(out, axis=1), 1.0, atol=1e-4))
    assert bool(jnp.allclose(out, ref, rtol=5e-2, atol=5e-3)), (out, ref)
    print("KERNEL_OK")
</pallas_src>

<mosaic_0001>
module attributes {stable_mosaic.version = 11 : i64} {
  func.func @k(%arg0: memref<8x128xf32, #tpu.memory_space<vmem>>, %arg1: memref<8x128xf32, #tpu.memory_space<vmem>>) attributes {dimension_semantics = [], scalar_prefetch = 0 : i64, scratch_operands = 0 : i64, tpu.core_type = #tpu.core_type<tc>} {
    %c0 = arith.constant 0 : index
    %c0_0 = arith.constant 0 : index
    %0 = vector.load %arg0[%c0, %c0_0] : memref<8x128xf32, #tpu.memory_space<vmem>>, vector<8x128xf32>
    %c1_i32 = arith.constant 1 : i32
    %1 = tpu.dynamic_rotate %0 by %c1_i32 dim 1 : vector<8x128xf32>, i32 -> vector<8x128xf32>
    %c0_1 = arith.constant 0 : index
    %c0_2 = arith.constant 0 : index
    %2 = vector.load %arg1[%c0_1, %c0_2] : memref<8x128xf32, #tpu.memory_space<vmem>>, vector<8x128xf32>
    tpu.vector_store %arg1[%c0_1, %c0_2], %1 {strides = array<i32>} : memref<8x128xf32, #tpu.memory_space<vmem>>, vector<8x128xf32>,
    return
  }
}

</mosaic_0001>

<bundles_post_ra>
// kernel: tpu_custom_call.1
= control target key start
LH: loop header
LB: loop body
LE: loop exit
PB: predicated region body
PF: predicated region fallthrough
CT: control target
= control target key end

     0   :  { %6 = vsyncpa [#allocation3], 0  ;;  %s128_s0 = inlined_call_operand.hbm [shape: f32[8,128], index: 0, kind: input, shape index: {}]   ;;  %s129_s1 = inlined_call_operand.hbm [shape: f32[8,128], index: 1, kind: output, shape index: {}]  }
   0x1   :  { %7 = vsyncpa [#allocation4], 0  ;;  %s91_s6 = smov [#allocation2]   ;;  %s43_s10 = scalar_lea.hbm %s128_s0, 128 }
   0x2   :  { %s14_s7 = sshll.u32 %s91_s6, 4  ;;  %p44_p0 = scmp.ne.s32.totalorder %s128_s0, %s43_s10  ;;  %s15_s7 = int_to_ptr.vmem [resolvable:$true] %s14_s7 }
   0x3   :  { %p47_p1 = scmp.lt.u32.totalorder %s43_s10, %s128_s0 }
   0x5   :  { %p49_p2 = pnand %p47_p1, %p44_p0 }
   0x7   :  { %52 = shalt.err (!%p49_p2)
}
   0x8   :  { %s53_s15 = scalar_lea.vmem %s15_s7, 128  ;;  %p58_p4 = scmp.lt.s32.totalorder %s15_s7, %s15_s7 }
   0x9   :  { %p54_p3 = scmp.ne.s32.totalorder %s15_s7, %s53_s15  ;;  %p59_p5 = scmp.lt.s32.totalorder %s53_s15, %s53_s15 }
   0xb   :  { %p60_p6 = por %p59_p5, %p58_p4 }
   0xd   :  { %p61_p7 = pnand %p60_p6, %p54_p3 }
   0xf   :  { %64 = shalt.err (!%p61_p7)
}
  0x10   :  { %17 = dma.hbm_to_vmem [thread:$0]  %s128_s0, 128, %s15_s7, [#allocation3]  }
  0x11   :  { %87 = dma.done.wait [#allocation3], 128  }
  0x12   :  { %88 = vsyncadd [#allocation3], 4294967168  ;;  %v21_v0 = vld [vmem:[#allocation2] sm:$0xff]  ;;  %s92_s18 = smov 1   ;;  %s93_s19 = smov [#allocation5]  }
  0x13   :  { %22 = vrot.lane.b32.xlu0 %v21_v0, %s92_s18  ;;  %s31_s20 = sshll.u32 %s93_s19, 4  ;;  %s32_s20 = int_to_ptr.vmem [resolvable:$true] %s31_s20 }
  0x14   :  { %s65_s21 = scalar_lea.vmem %s32_s20, 128  ;;  %p70_p9 = scmp.lt.s32.totalorder %s32_s20, %s32_s20 }
  0x15   :  { %p66_p8 = scmp.ne.s32.totalorder %s32_s20, %s65_s21  ;;  %p71_p10 = scmp.lt.s32.totalorder %s65_s21, %s65_s21 }
  0x17   :  { %p72_p11 = por %p71_p10, %p70_p9 }
  0x19   :  { %p73_p12 = pnand %p72_p11, %p66_p8 }
  0x85   :  { %v23_v1 = vpop.permute.xlu0 %22 }
  0x86   :  { %24 = vst [vmem:[#allocation5] sm:$0xff] %v23_v1 }
  0x87   :  { %76 = shalt.err (!%p73_p12)
}
  0x88   :  { %s77_s0 = scalar_lea.hbm %s129_s1, 128 }
  0x89   :  { %p78_p13 = scmp.ne.s32.totalorder %s129_s1, %s77_s0  ;;  %p81_p0 = scmp.lt.u32.totalorder %s77_s0, %s129_s1 }
  0x8b   :  { %p83_p1 = pnand %p81_p0, %p78_p13 }
  0x8d   :  { %86 = shalt.err (!%p83_p1)
}
  0x8e   :  { %34 = dma.vmem_to_hbm [thread:$0]  %s32_s20, 128, %s129_s1, [#allocation4]  }
  0x8f   :  { %89 = dma.done.wait [#allocation4], 128  }
  0x90   :  { %90 = vsyncadd [#allocation4], 4294967168 }
  0x91   :  { %38 = vsyncpa [#allocation3], 1 }
  0x92   :  { %39 = vsyncpa [#allocation4], 1 }

</bundles_post_ra>
